<compile_context>
chip_gen: v6e
topology: v6e:2x2x1
jax: 0.10.0
libtpu: 0.0.40
codegen_flags: <defaults>
</compile_context>

<pallas_src>
import functools

import jax
import jax.numpy as jnp
from jax import lax
from jax.experimental import pallas as pl
from jax.experimental.pallas import tpu as pltpu


def _round_up(x, m):
    return ((x + m - 1) // m) * m


def _divisor_tile(total_units, max_units):
    """Largest d <= max_units that divides total_units (d >= 1)."""
    d = max(1, min(int(max_units), int(total_units)))
    while total_units % d != 0:
        d -= 1
    return d


def _vmem_budget_bytes():
    """Per-generation VMEM budget: chip capacity minus headroom for compiler scratch."""
    try:
        cap = int(pltpu.get_tpu_info().vmem_capacity_bytes)
    except Exception:
        cap = 64 << 20  # conservative v7x-class assumption
    return max(cap - (16 << 20), 24 << 20)


def _mlp_head_kernel(x_ref, w1_ref, b1_ref, w2_ref, b2_ref, o_ref):
    """Fully VMEM-resident weights, batch-tiled grid."""
    # Linear 1 (MXU, f32 accumulation) -> bias -> ReLU.
    h = jnp.dot(x_ref[...], w1_ref[...], preferred_element_type=jnp.float32)
    h = jnp.maximum(h + b1_ref[...], 0.0)
    # Linear 2 (MXU, f32 accumulation) -> bias.
    y = jnp.dot(h.astype(w2_ref.dtype), w2_ref[...],
                preferred_element_type=jnp.float32)
    y = y + b2_ref[...]
    # F.normalize(y, dim=1, p=2, eps=1e-12) == y * rsqrt(max(sum(y*y), eps^2)).
    # rsqrt runs on the EUP (separate VLIW slot); full precision, no Newton steps.
    s = jnp.maximum(jnp.sum(y * y, axis=1, keepdims=True), 1e-24)
    o_ref[...] = (y * lax.rsqrt(s)).astype(o_ref.dtype)


def _mlp_head_kernel_ktiled(x_ref, w1_ref, b1_ref, w2_ref, b2_ref, o_ref, h_acc):
    """K-tiled schedule over din (used when resident weights exceed VMEM budget)."""
    k = pl.program_id(1)

    @pl.when(k == 0)
    def _():
        h_acc[...] = jnp.zeros_like(h_acc)

    h_acc[...] += jnp.dot(x_ref[...], w1_ref[...],
                          preferred_element_type=jnp.float32)

    @pl.when(k == pl.num_programs(1) - 1)
    def _():
        h = jnp.maximum(h_acc[...] + b1_ref[...], 0.0)
        y = jnp.dot(h.astype(w2_ref.dtype), w2_ref[...],
                    preferred_element_type=jnp.float32)
        y = y + b2_ref[...]
        s = jnp.maximum(jnp.sum(y * y, axis=1, keepdims=True), 1e-24)
        o_ref[...] = (y * lax.rsqrt(s)).astype(o_ref.dtype)


@functools.partial(jax.jit,
                   static_argnames=("use_bf16", "block_b", "k_block", "out_dtype"))
def mlp_head(x, w1, b1, w2, b2, *, use_bf16=True, block_b=512, k_block=None,
             out_dtype=jnp.float32):
    """x: (B, dim_in); w1: (dim_in, dim_h); b1: (dim_h,); w2: (dim_h, dim_feat);
    b2: (dim_feat,). Weights are (in, out), i.e. PyTorch's x @ W.T layout."""
    B, din = x.shape
    dh = w1.shape[1]
    dfeat = w2.shape[1]

    # Lane-dense padding: feature dims -> multiples of 128; batch tile -> multiple of 8.
    din_p = _round_up(din, 128)
    dh_p = _round_up(dh, 128)
    dfeat_p = _round_up(dfeat, 128)

    # Batch tile: multiple of 8 (block-shape rule). If a large batch would collapse
    # to a single grid step, split it so ("parallel",) can use both v7x TensorCores.
    tb = _round_up(min(block_b, B), 8)
    if B >= 128 and _round_up(B, tb) == tb:
        tb = _round_up((B + 1) // 2, 8)

    mm_dtype = jnp.bfloat16 if use_bf16 else x.dtype
    in_bytes = jnp.dtype(mm_dtype).itemsize
    out_bytes = jnp.dtype(out_dtype).itemsize
    budget = _vmem_budget_bytes()

    def resident_est(tb_):
        return (2 * (din_p * dh_p + dh_p * dfeat_p) * in_bytes   # double-buffered weights
                + 2 * (dh_p + dfeat_p) * 4                        # biases
                + 2 * tb_ * din_p * in_bytes                      # x tiles
                + 2 * tb_ * dfeat_p * out_bytes                   # out tiles
                + tb_ * (dh_p + dfeat_p) * 4)                     # f32 h/y intermediates

    def ktiled_est(tb_, tk_):
        return (2 * (tk_ * dh_p + dh_p * dfeat_p) * in_bytes
                + 2 * (dh_p + dfeat_p) * 4
                + 2 * tb_ * tk_ * in_bytes
                + 2 * tb_ * dfeat_p * out_bytes
                + tb_ * dh_p * 4                                  # accumulator scratch
                + tb_ * dfeat_p * 4)

    # Schedule selection: prefer fully-resident weights; shrink the batch tile first;
    # fall back to K-tiling over din if the weights themselves blow the VMEM budget.
    if k_block is None:
        while tb > 8 and resident_est(tb) > budget:
            tb = _round_up(tb // 2, 8)
        use_ktiled = resident_est(tb) > budget
    else:
        use_ktiled = True

    tk = din_p
    if use_ktiled:
        units = din_p // 128
        if k_block is not None:
            tk = 128 * _divisor_tile(units, max(1, int(k_block) // 128))
        else:
            d = units
            while d > 1 and ktiled_est(tb, 128 * d) > budget:
                d -= 1
                while units % d != 0:
                    d -= 1
            tk = 128 * d
            while tb > 8 and ktiled_est(tb, tk) > budget:
                tb = _round_up(tb // 2, 8)

    b_p = _round_up(B, tb)

    def prep(a, rows, cols, dtype):
        if a.shape != (rows, cols):
            a = jnp.pad(a, ((0, rows - a.shape[0]), (0, cols - a.shape[1])))
        return a.astype(dtype)  # no-op when dtype already matches

    xp = prep(x, b_p, din_p, mm_dtype)
    w1p = prep(w1, din_p, dh_p, mm_dtype)
    w2p = prep(w2, dh_p, dfeat_p, mm_dtype)
    b1p = prep(b1.reshape(1, -1), 1, dh_p, jnp.float32)
    b2p = prep(b2.reshape(1, -1), 1, dfeat_p, jnp.float32)

    if not use_ktiled:
        est = resident_est(tb)
        vmem_limit = int(min(max(int(1.25 * est), 32 << 20), budget))
        out = pl.pallas_call(
            _mlp_head_kernel,
            out_shape=jax.ShapeDtypeStruct((b_p, dfeat_p), out_dtype),
            grid=(b_p // tb,),
            in_specs=[
                pl.BlockSpec((tb, din_p), lambda i: (i, 0)),       # batch-tiled x
                pl.BlockSpec((din_p, dh_p), lambda i: (0, 0)),     # resident w1
                pl.BlockSpec((1, dh_p), lambda i: (0, 0)),         # resident b1
                pl.BlockSpec((dh_p, dfeat_p), lambda i: (0, 0)),   # resident w2
                pl.BlockSpec((1, dfeat_p), lambda i: (0, 0)),      # resident b2
            ],
            out_specs=pl.BlockSpec((tb, dfeat_p), lambda i: (i, 0)),
            compiler_params=pltpu.CompilerParams(
                dimension_semantics=("parallel",),
                vmem_limit_bytes=vmem_limit),
        )(xp, w1p, b1p, w2p, b2p)
    else:
        est = ktiled_est(tb, tk)
        vmem_limit = int(min(max(int(1.25 * est), 32 << 20), budget))
        out = pl.pallas_call(
            _mlp_head_kernel_ktiled,
            out_shape=jax.ShapeDtypeStruct((b_p, dfeat_p), out_dtype),
            grid=(b_p // tb, din_p // tk),
            in_specs=[
                pl.BlockSpec((tb, tk), lambda i, k: (i, k)),       # x tile
                pl.BlockSpec((tk, dh_p), lambda i, k: (k, 0)),     # w1 K-slab
                pl.BlockSpec((1, dh_p), lambda i, k: (0, 0)),      # resident b1
                pl.BlockSpec((dh_p, dfeat_p), lambda i, k: (0, 0)),  # resident w2
                pl.BlockSpec((1, dfeat_p), lambda i, k: (0, 0)),   # resident b2
            ],
            out_specs=pl.BlockSpec((tb, dfeat_p), lambda i, k: (i, 0)),
            scratch_shapes=[pltpu.VMEM((tb, dh_p), jnp.float32)],
            compiler_params=pltpu.CompilerParams(
                dimension_semantics=("parallel", "arbitrary"),
                vmem_limit_bytes=vmem_limit),
        )(xp, w1p, b1p, w2p, b2p)

    if b_p != B or dfeat_p != dfeat:
        out = out[:B, :dfeat]
    return out


def reference(x, w1, b1, w2, b2):
    h = jnp.maximum(jnp.dot(x, w1, precision=lax.Precision.HIGHEST) + b1, 0.0)
    y = jnp.dot(h, w2, precision=lax.Precision.HIGHEST) + b2
    n = jnp.sqrt(jnp.sum(y * y, axis=1, keepdims=True))
    return y / jnp.maximum(n, 1e-12)


if __name__ == "__main__":
    # Module hyperparameters (dim_h defaults to dim_in, as in MLPHead.__init__).
    batch, dim_in, dim_feat = 64, 256, 64
    dim_h = dim_in

    key = jax.random.PRNGKey(0)
    kx, kw1, kb1, kw2, kb2 = jax.random.split(key, 5)

    x = jax.random.normal(kx, (batch, dim_in), dtype=jnp.float32)

    bound1 = 1.0 / float(dim_in) ** 0.5
    bound2 = 1.0 / float(dim_h) ** 0.5
    w1 = jax.random.uniform(kw1, (dim_in, dim_h), jnp.float32, -bound1, bound1)
    b1 = jax.random.uniform(kb1, (dim_h,), jnp.float32, -bound1, bound1)
    w2 = jax.random.uniform(kw2, (dim_h, dim_feat), jnp.float32, -bound2, bound2)
    b2 = jax.random.uniform(kb2, (dim_feat,), jnp.float32, -bound2, bound2)

    ref = reference(x, w1, b1, w2, b2)

    # Strict f32-MXU path: must match F.normalize(Linear->ReLU->Linear) tightly.
    out_f32 = jax.block_until_ready(mlp_head(x, w1, b1, w2, b2, use_bf16=False))
    assert out_f32.shape == (batch, dim_feat)
    assert jnp.allclose(out_f32, ref, atol=2e-5, rtol=2e-5), "f32 mismatch vs reference"

    # Default bf16-MXU fast path (f32 accumulation), looser tolerance.
    out_bf16 = jax.block_until_ready(mlp_head(x, w1, b1, w2, b2))
    assert jnp.allclose(out_bf16, ref, atol=3e-2, rtol=3e-2), "bf16 mismatch vs reference"

    # K-tiled fallback schedule (forced), as used when weights exceed the VMEM budget.
    out_kt = jax.block_until_ready(
        mlp_head(x, w1, b1, w2, b2, use_bf16=False, k_block=128))
    assert jnp.allclose(out_kt, ref, atol=2e-5, rtol=2e-5), "k-tiled mismatch vs reference"

    print("KERNEL_OK")
</pallas_src>

<mosaic_0001>
module attributes {stable_mosaic.version = 11 : i64} {
  func.func @_mlp_head_kernel(%arg0: i32, %arg1: memref<64x256xf32, #tpu.memory_space<vmem>>, %arg2: memref<256x256xf32, #tpu.memory_space<vmem>>, %arg3: memref<1x256xf32, #tpu.memory_space<vmem>>, %arg4: memref<256x128xf32, #tpu.memory_space<vmem>>, %arg5: memref<1x128xf32, #tpu.memory_space<vmem>>, %arg6: memref<64x128xf32, #tpu.memory_space<vmem>>) attributes {dimension_semantics = [#tpu.dimension_semantics<parallel>], iteration_bounds = array<i64: 1>, scalar_prefetch = 0 : i64, scratch_operands = 0 : i64, tpu.core_type = #tpu.core_type<tc>, window_params = [{transform_indices = @transform_0, window_bounds = array<i64: 64, 256>}, {pipeline_mode = #tpu.pipeline_mode<synchronous>, transform_indices = @transform_1, window_bounds = array<i64: 256, 256>}, {pipeline_mode = #tpu.pipeline_mode<synchronous>, transform_indices = @transform_2, window_bounds = array<i64: 1, 256>}, {pipeline_mode = #tpu.pipeline_mode<synchronous>, transform_indices = @transform_3, window_bounds = array<i64: 256, 128>}, {pipeline_mode = #tpu.pipeline_mode<synchronous>, transform_indices = @transform_4, window_bounds = array<i64: 1, 128>}, {transform_indices = @transform_5, window_bounds = array<i64: 64, 128>}]} {
    %c0 = arith.constant 0 : index
    %c0_0 = arith.constant 0 : index
    %0 = vector.load %arg1[%c0, %c0_0] : memref<64x256xf32, #tpu.memory_space<vmem>>, vector<64x256xf32>
    %c0_1 = arith.constant 0 : index
    %c0_2 = arith.constant 0 : index
    %1 = vector.load %arg2[%c0_1, %c0_2] : memref<256x256xf32, #tpu.memory_space<vmem>>, vector<256x256xf32>
    %cst = arith.constant dense<0.000000e+00> : vector<64x256xf32>
    %2 = tpu.matmul %0, %1, %cst {dimension_numbers = #tpu.dot_dimension_numbers<[1], [0], [0], [1], [0, 0, 1, 1], [], []>} : vector<64x256xf32>, vector<256x256xf32>, vector<64x256xf32> -> vector<64x256xf32>
    %c0_3 = arith.constant 0 : index
    %c0_4 = arith.constant 0 : index
    %3 = vector.load %arg3[%c0_3, %c0_4] : memref<1x256xf32, #tpu.memory_space<vmem>>, vector<1x256xf32>
    %4 = vector.broadcast %3 : vector<1x256xf32> to vector<64x256xf32>
    %5 = arith.addf %2, %4 : vector<64x256xf32>
    %cst_5 = arith.constant 0.000000e+00 : f32
    %6 = vector.broadcast %cst_5 : f32 to vector<64x256xf32>
    %7 = arith.maximumf %5, %6 : vector<64x256xf32>
    %c0_6 = arith.constant 0 : index
    %c0_7 = arith.constant 0 : index
    %8 = vector.load %arg4[%c0_6, %c0_7] : memref<256x128xf32, #tpu.memory_space<vmem>>, vector<256x128xf32>
    %cst_8 = arith.constant dense<0.000000e+00> : vector<64x128xf32>
    %9 = tpu.matmul %7, %8, %cst_8 {dimension_numbers = #tpu.dot_dimension_numbers<[1], [0], [0], [1], [0, 0, 1, 1], [], []>} : vector<64x256xf32>, vector<256x128xf32>, vector<64x128xf32> -> vector<64x128xf32>
    %c0_9 = arith.constant 0 : index
    %c0_10 = arith.constant 0 : index
    %10 = vector.load %arg5[%c0_9, %c0_10] : memref<1x128xf32, #tpu.memory_space<vmem>>, vector<1x128xf32>
    %11 = vector.broadcast %10 : vector<1x128xf32> to vector<64x128xf32>
    %12 = arith.addf %9, %11 : vector<64x128xf32>
    %13 = arith.mulf %12, %12 : vector<64x128xf32>
    %cst_11 = arith.constant dense<0.000000e+00> : vector<64xf32>
    %14 = vector.multi_reduction <add>, %13, %cst_11 [1] : vector<64x128xf32> to vector<64xf32>
    %15 = vector.shape_cast %14 : vector<64xf32> to vector<64x1xf32>
    %cst_12 = arith.constant 1.000000e-24 : f32
    %16 = vector.broadcast %cst_12 : f32 to vector<64x1xf32>
    %17 = arith.maximumf %15, %16 : vector<64x1xf32>
    %18 = math.rsqrt %17 : vector<64x1xf32>
    %19 = vector.broadcast %18 : vector<64x1xf32> to vector<64x128xf32>
    %20 = arith.mulf %12, %19 : vector<64x128xf32>
    %c0_13 = arith.constant 0 : index
    %c0_14 = arith.constant 0 : index
    %21 = vector.load %arg6[%c0_13, %c0_14] : memref<64x128xf32, #tpu.memory_space<vmem>>, vector<64x128xf32>
    tpu.vector_store %arg6[%c0_13, %c0_14], %20 {strides = array<i32>} : memref<64x128xf32, #tpu.memory_space<vmem>>, vector<64x128xf32>,
    return
  }
  func.func @transform_0(%arg0: i32) -> (i32, i32) {
    %c0_i32 = arith.constant 0 : i32
    %c0_i32_0 = arith.constant 0 : i32
    return %arg0, %c0_i32 : i32, i32
  }
  func.func @transform_1(%arg0: i32) -> (i32, i32) {
    %c0_i32 = arith.constant 0 : i32
    %c0_i32_0 = arith.constant 0 : i32
    %c0_i32_1 = arith.constant 0 : i32
    return %c0_i32, %c0_i32_0 : i32, i32
  }
  func.func @transform_2(%arg0: i32) -> (i32, i32) {
    %c0_i32 = arith.constant 0 : i32
    %c0_i32_0 = arith.constant 0 : i32
    %c0_i32_1 = arith.constant 0 : i32
    return %c0_i32, %c0_i32_0 : i32, i32
  }
  func.func @transform_3(%arg0: i32) -> (i32, i32) {
    %c0_i32 = arith.constant 0 : i32
    %c0_i32_0 = arith.constant 0 : i32
    %c0_i32_1 = arith.constant 0 : i32
    return %c0_i32, %c0_i32_0 : i32, i32
  }
  func.func @transform_4(%arg0: i32) -> (i32, i32) {
    %c0_i32 = arith.constant 0 : i32
    %c0_i32_0 = arith.constant 0 : i32
    %c0_i32_1 = arith.constant 0 : i32
    return %c0_i32, %c0_i32_0 : i32, i32
  }
  func.func @transform_5(%arg0: i32) -> (i32, i32) {
    %c0_i32 = arith.constant 0 : i32
    %c0_i32_0 = arith.constant 0 : i32
    return %arg0, %c0_i32 : i32, i32
  }
}

</mosaic_0001>

<bundles_post_ra>
// kernel: mlp_head.1
= control target key start
LH: loop header
LB: loop body
LE: loop exit
PB: predicated region body
PF: predicated region fallthrough
CT: control target
= control target key end

     0   :  { %s934_s0 = inlined_call_operand.vmem [shape: f32[64,256], index: 0, kind: input, shape index: {}]   ;;  %s935_s1 = inlined_call_operand.vmem [shape: f32[256,256], index: 1, kind: input, shape index: {}]   ;;  %s936_s2 = inlined_call_operand.vmem [shape: f32[1,256], index: 2, kind: input, shape index: {}]   ;;  %s937_s3 = inlined_call_operand.vmem [shape: f32[256,128], index: 3, kind: input, shape index: {}]   ;;  %s938_s4 = inlined_call_operand.vmem [shape: f32[1,128], index: 4, kind: input, shape index: {}]   ;;  %s939_s5 = inlined_call_operand.hbm [shape: f32[64,128], index: 5, kind: output, shape index: {}]  }
   0x1   :  { %v68_v0 = vld [vmem:[%s935_s1 + $0xf8] sm:$0xff]  ;;  %v67_v1 = vld [vmem:[%s935_s1 + $0xf0] sm:$0xff]  ;;  %v66_v2 = vld [vmem:[%s935_s1 + $0xe8] sm:$0xff] }
   0x2   :  { %113 = vmatprep.subr.mxu0 %v68_v0  ;;  %v65_v3 = vld [vmem:[%s935_s1 + $0xe0] sm:$0xff]  ;;  %v64_v4 = vld [vmem:[%s935_s1 + $0xd8] sm:$0xff]  ;;  %v63_v5 = vld [vmem:[%s935_s1 + $0xd0] sm:$0xff] }
   0x3   :  { %114 = vmatpush1.msra.mxu0 %v67_v1  ;;  %v62_v6 = vld [vmem:[%s935_s1 + $0xc8] sm:$0xff]  ;;  %v61_v7 = vld [vmem:[%s935_s1 + $0xc0] sm:$0xff]  ;;  %v60_v8 = vld [vmem:[%s935_s1 + $0xb8] sm:$0xff] }
   0x4   :  { %115 = vmatprep.subr.mxu0 %v66_v2  ;;  %v59_v9 = vld [vmem:[%s935_s1 + $0xb0] sm:$0xff]  ;;  %v58_v10 = vld [vmem:[%s935_s1 + $0xa8] sm:$0xff]  ;;  %v57_v11 = vld [vmem:[%s935_s1 + $0xa0] sm:$0xff] }
   0x5   :  { %116 = vmatpush1.msra.mxu0 %v65_v3  ;;  %v56_v12 = vld [vmem:[%s935_s1 + $0x98] sm:$0xff]  ;;  %v55_v13 = vld [vmem:[%s935_s1 + $0x90] sm:$0xff]  ;;  %v54_v14 = vld [vmem:[%s935_s1 + $0x88] sm:$0xff] }
   0x6   :  { %117 = vmatprep.subr.mxu0 %v64_v4  ;;  %v53_v15 = vld [vmem:[%s935_s1 + $0x80] sm:$0xff]  ;;  %v52_v16 = vld [vmem:[%s935_s1 + $0x78] sm:$0xff]  ;;  %v51_v17 = vld [vmem:[%s935_s1 + $0x70] sm:$0xff] }
   0x7   :  { %118 = vmatpush1.msra.mxu0 %v63_v5  ;;  %v50_v18 = vld [vmem:[%s935_s1 + $0x68] sm:$0xff]  ;;  %v49_v19 = vld [vmem:[%s935_s1 + $0x60] sm:$0xff]  ;;  %v48_v20 = vld [vmem:[%s935_s1 + $0x58] sm:$0xff] }
   0x8   :  { %119 = vmatprep.subr.mxu0 %v62_v6  ;;  %v47_v21 = vld [vmem:[%s935_s1 + $0x50] sm:$0xff]  ;;  %v46_v22 = vld [vmem:[%s935_s1 + $0x48] sm:$0xff]  ;;  %v45_v23 = vld [vmem:[%s935_s1 + $0x40] sm:$0xff] }
   0x9   :  { %120 = vmatpush1.msra.mxu0 %v61_v7  ;;  %v22_v24 = vld [vmem:[%s934_s0 + $0x8] sm:$0xff]  ;;  %v44_v25 = vld [vmem:[%s935_s1 + $0x38] sm:$0xff]  ;;  %v43_v26 = vld [vmem:[%s935_s1 + $0x30] sm:$0xff] }
   0xa   :  { %121 = vmatprep.subr.mxu0 %v60_v8  ;;  %177 = vmatprep.mubr.f32.mxu0 %v22_v24  ;;  %v42_v27 = vld [vmem:[%s935_s1 + $0x28] sm:$0xff]  ;;  %v41_v28 = vld [vmem:[%s935_s1 + $0x20] sm:$0xff]  ;;  %v40_v29 = vld [vmem:[%s935_s1 + $0x18] sm:$0xff] }
   0xb   :  { %122 = vmatpush1.msra.mxu0 %v59_v9  ;;  %v39_v30 = vld [vmem:[%s935_s1 + $0x10] sm:$0xff]  ;;  %v273_v31 = vld [vmem:[%s937_s3 + $0xf8] sm:$0xff]  ;;  %v38_v35 = vld [vmem:[%s935_s1 + $0x8] sm:$0xff] }
   0xc   :  { %123 = vmatprep.subr.mxu0 %v58_v10  ;;  %459 = vmatprep.subr.mxu1 %v273_v31  ;;  %v257_v32 = vld [vmem:[%s937_s3 + $0x78] sm:$0xff]  ;;  %v272_v33 = vld [vmem:[%s937_s3 + $0xf0] sm:$0xff]  ;;  %v271_v36 = vld [vmem:[%s937_s3 + $0xe8] sm:$0xff] }
   0xd   :  { %124 = vmatpush1.msra.mxu0 %v57_v11  ;;  %v256_v34 = vld [vmem:[%s937_s3 + $0x70] sm:$0xff]  ;;  %460 = vmatpush3.msra.mxu1 %v257_v32  ;;  %v37_v37 = vld [vmem:[%s935_s1] sm:$0xff]  ;;  %v255_v38 = vld [vmem:[%s937_s3 + $0x68] sm:$0xff] }
   0xe   :  { %125 = vmatprep.subr.mxu0 %v56_v12  ;;  %461 = vmatprep.subr.mxu1 %v272_v33  ;;  %v100_v39 = vld [vmem:[%s935_s1 + $0x1f8] sm:$0xff]  ;;  %v270_v40 = vld [vmem:[%s937_s3 + $0xe0] sm:$0xff]  ;;  %v99_v41 = vld [vmem:[%s935_s1 + $0x1f0] sm:$0xff] }
   0xf   :  { %126 = vmatpush1.msra.mxu0 %v55_v13  ;;  %462 = vmatpush3.msra.mxu1 %v256_v34  ;;  %v254_v42 = vld [vmem:[%s937_s3 + $0x60] sm:$0xff]  ;;  %v98_v43 = vld [vmem:[%s935_s1 + $0x1e8] sm:$0xff]  ;;  %v269_v44 = vld [vmem:[%s937_s3 + $0xd8] sm:$0xff] }
  0x10   :  { %127 = vmatprep.subr.mxu0 %v54_v14  ;;  %463 = vmatprep.subr.mxu1 %v271_v36  ;;  %v97_v45 = vld [vmem:[%s935_s1 + $0x1e0] sm:$0xff]  ;;  %v253_v46 = vld [vmem:[%s937_s3 + $0x58] sm:$0xff]  ;;  %v268_v48 = vld [vmem:[%s937_s3 + $0xd0] sm:$0xff] }
  0x11   :  { %128 = vmatpush1.msra.mxu0 %v53_v15  ;;  %464 = vmatpush3.msra.mxu1 %v255_v38  ;;  %v96_v47 = vld [vmem:[%s935_s1 + $0x1d8] sm:$0xff]  ;;  %v95_v49 = vld [vmem:[%s935_s1 + $0x1d0] sm:$0xff] }
  0x12   :  { %129 = vmatprep.subr.mxu0 %v52_v16  ;;  %465 = vmatprep.subr.mxu1 %v270_v40  ;;  %v252_v50 = vld [vmem:[%s937_s3 + $0x50] sm:$0xff] }
  0x13   :  { %130 = vmatpush1.msra.mxu0 %v51_v17  ;;  %466 = vmatpush3.msra.mxu1 %v254_v42 }
  0x14   :  { %131 = vmatprep.subr.mxu0 %v50_v18  ;;  %467 = vmatprep.subr.mxu1 %v269_v44 }
  0x15   :  { %132 = vmatpush1.msra.mxu0 %v49_v19 }
  0x16   :  { %133 = vmatprep.subr.mxu0 %v48_v20 }
  0x17   :  { %134 = vmatpush1.msra.mxu0 %v47_v21 }
  0x18   :  { %135 = vmatprep.subr.mxu0 %v46_v22 }
  0x19   :  { %136 = vmatpush1.msra.mxu0 %v45_v23 }
  0x1a   :  { %137 = vmatprep.subr.mxu0 %v44_v25 }
  0x1b   :  { %138 = vmatpush1.msra.mxu0 %v43_v26 }
  0x1c   :  { %139 = vmatprep.subr.mxu0 %v42_v27 }
  0x1d   :  { %140 = vmatpush1.msra.mxu0 %v41_v28 }
  0x1e   :  { %141 = vmatprep.subr.mxu0 %v40_v29 }
  0x1f   :  { %142 = vmatpush1.msra.mxu0 %v39_v30 }
  0x20   :  { %143 = vmatprep.subr.mxu0 %v38_v35 }
  0x21   :  { %144 = vmatpush1.msra.mxu0 %v37_v37 }
  0x22   :  { %145 = vmatprep.subr.mxu0 %v100_v39 }
  0x23   :  { %146 = vmatpush2.msra.mxu0 %v99_v41 }
  0x24   :  { %147 = vmatprep.subr.mxu0 %v98_v43 }
  0x25   :  { %10 = vsyncpa [#allocation3], 0  ;;  %148 = vmatpush2.msra.mxu0 %v97_v45  ;;  %v94_v51 = vld [vmem:[%s935_s1 + $0x1c8] sm:$0xff]  ;;  %468 = vmatpush3.msra.mxu1 %v253_v46  ;;  %v93_v53 = vld [vmem:[%s935_s1 + $0x1c0] sm:$0xff] }
  0x26   :  { %v267_v52 = vld [vmem:[%s937_s3 + $0xc8] sm:$0xff]  ;;  %149 = vmatprep.subr.mxu0 %v96_v47  ;;  %469 = vmatprep.subr.mxu1 %v268_v48  ;;  %v92_v55 = vld [vmem:[%s935_s1 + $0x1b8] sm:$0xff]  ;;  %v266_v56 = vld [vmem:[%s937_s3 + $0xc0] sm:$0xff]  ;;  %v103_v48 = vlaneseq }
  0x27   :  { %v251_v54 = vld [vmem:[%s937_s3 + $0x48] sm:$0xff]  ;;  %150 = vmatpush2.msra.mxu0 %v95_v49  ;;  %470 = vmatpush3.msra.mxu1 %v252_v50  ;;  %v91_v57 = vld [vmem:[%s935_s1 + $0x1b0] sm:$0xff]  ;;  %v250_v58 = vld [vmem:[%s937_s3 + $0x40] sm:$0xff] }
  0x28   :  { %151 = vmatprep.subr.mxu0 %v94_v51  ;;  %471 = vmatprep.subr.mxu1 %v267_v52  ;;  %v90_v59 = vld [vmem:[%s935_s1 + $0x1a8] sm:$0xff]  ;;  %v265_v60 = vld [vmem:[%s937_s3 + $0xb8] sm:$0xff]  ;;  %v89_v61 = vld [vmem:[%s935_s1 + $0x1a0] sm:$0xff]  ;;  %v104_v49 = vshrl.u32 %v103_v48, 7 }
  0x29   :  { %152 = vmatpush2.msra.mxu0 %v93_v53  ;;  %472 = vmatpush3.msra.mxu1 %v251_v54  ;;  %v249_v62 = vld [vmem:[%s937_s3 + $0x38] sm:$0xff]  ;;  %v264_v0 = vld [vmem:[%s937_s3 + $0xb0] sm:$0xff]  ;;  %v86_v3 = vld [vmem:[%s935_s1 + $0x188] sm:$0xff] }
  0x2a   :  { %153 = vmatprep.subr.mxu0 %v92_v55  ;;  %473 = vmatprep.subr.mxu1 %v266_v56  ;;  %v88_v63 = vld [vmem:[%s935_s1 + $0x198] sm:$0xff]  ;;  %v87_v1 = vld [vmem:[%s935_s1 + $0x190] sm:$0xff]  ;;  %v263_v4 = vld [vmem:[%s937_s3 + $0xa8] sm:$0xff]  ;;  %v105_v50 = vsub.s32 0, %v104_v49  ;;  %v109_v52 = vsub.s32 1, %v104_v49 }
  0x2b   :  { %154 = vmatpush2.msra.mxu0 %v91_v57  ;;  %474 = vmatpush3.msra.mxu1 %v250_v58  ;;  %v248_v2 = vld [vmem:[%s937_s3 + $0x30] sm:$0xff]  ;;  %v85_v5 = vld [vmem:[%s935_s1 + $0x180] sm:$0xff]  ;;  %v247_v6 = vld [vmem:[%s937_s3 + $0x28] sm:$0xff] }
  0x2c   :  { %155 = vmatprep.subr.mxu0 %v90_v59  ;;  %475 = vmatprep.subr.mxu1 %v265_v60  ;;  %v84_v7 = vld [vmem:[%s935_s1 + $0x178] sm:$0xff]  ;;  %v262_v8 = vld [vmem:[%s937_s3 + $0xa0] sm:$0xff]  ;;  %v83_v9 = vld [vmem:[%s935_s1 + $0x170] sm:$0xff] }
  0x2d   :  { %156 = vmatpush2.msra.mxu0 %v89_v61  ;;  %476 = vmatpush3.msra.mxu1 %v249_v62  ;;  %v246_v10 = vld [vmem:[%s937_s3 + $0x20] sm:$0xff]  ;;  %v82_v11 = vld [vmem:[%s935_s1 + $0x168] sm:$0xff]  ;;  %v80_v13 = vld [vmem:[%s935_s1 + $0x158] sm:$0xff] }
  0x2e   :  { %157 = vmatprep.subr.mxu0 %v88_v63  ;;  %477 = vmatprep.subr.mxu1 %v264_v0  ;;  %v81_v12 = vld [vmem:[%s935_s1 + $0x160] sm:$0xff]  ;;  %v79_v14 = vld [vmem:[%s935_s1 + $0x150] sm:$0xff]  ;;  %v78_v15 = vld [vmem:[%s935_s1 + $0x148] sm:$0xff] }
  0x2f   :  { %158 = vmatpush2.msra.mxu0 %v87_v1  ;;  %478 = vmatpush3.msra.mxu1 %v248_v2  ;;  %v77_v16 = vld [vmem:[%s935_s1 + $0x140] sm:$0xff]  ;;  %v76_v17 = vld [vmem:[%s935_s1 + $0x138] sm:$0xff]  ;;  %v75_v18 = vld [vmem:[%s935_s1 + $0x130] sm:$0xff] }
  0x30   :  { %159 = vmatprep.subr.mxu0 %v86_v3  ;;  %479 = vmatprep.subr.mxu1 %v263_v4  ;;  %v74_v19 = vld [vmem:[%s935_s1 + $0x128] sm:$0xff]  ;;  %v73_v20 = vld [vmem:[%s935_s1 + $0x120] sm:$0xff]  ;;  %v72_v21 = vld [vmem:[%s935_s1 + $0x118] sm:$0xff] }
  0x31   :  { %160 = vmatpush2.msra.mxu0 %v85_v5  ;;  %480 = vmatpush3.msra.mxu1 %v247_v6  ;;  %v71_v22 = vld [vmem:[%s935_s1 + $0x110] sm:$0xff]  ;;  %v70_v23 = vld [vmem:[%s935_s1 + $0x108] sm:$0xff]  ;;  %v69_v24 = vld [vmem:[%s935_s1 + $0x100] sm:$0xff] }
  0x32   :  { %161 = vmatprep.subr.mxu0 %v84_v7  ;;  %481 = vmatprep.subr.mxu1 %v262_v8  ;;  %v21_v25 = vld [vmem:[%s934_s0] sm:$0xff]  ;;  %v24_v26 = vld [vmem:[%s934_s0 + $0x18] sm:$0xff]  ;;  %v23_v27 = vld [vmem:[%s934_s0 + $0x10] sm:$0xff] }
  0x33   :  { %162 = vmatpush2.msra.mxu0 %v83_v9  ;;  %482 = vmatpush3.msra.mxu1 %v246_v10  ;;  %v26_v28 = vld [vmem:[%s934_s0 + $0x28] sm:$0xff]  ;;  %v25_v29 = vld [vmem:[%s934_s0 + $0x20] sm:$0xff]  ;;  %v28_v30 = vld [vmem:[%s934_s0 + $0x38] sm:$0xff] }
  0x34   :  { %163 = vmatprep.subr.mxu0 %v82_v11  ;;  %v27_v31 = vld [vmem:[%s934_s0 + $0x30] sm:$0xff]  ;;  %v30_v32 = vld [vmem:[%s934_s0 + $0x48] sm:$0xff]  ;;  %v29_v33 = vld [vmem:[%s934_s0 + $0x40] sm:$0xff] }
  0x35   :  { %164 = vmatpush2.msra.mxu0 %v81_v12  ;;  %v32_v34 = vld [vmem:[%s934_s0 + $0x58] sm:$0xff]  ;;  %v31_v35 = vld [vmem:[%s934_s0 + $0x50] sm:$0xff]  ;;  %v34_v36 = vld [vmem:[%s934_s0 + $0x68] sm:$0xff] }
  0x36   :  { %165 = vmatprep.subr.mxu0 %v80_v13  ;;  %v33_v37 = vld [vmem:[%s934_s0 + $0x60] sm:$0xff]  ;;  %v36_v38 = vld [vmem:[%s934_s0 + $0x78] sm:$0xff]  ;;  %v35_v39 = vld [vmem:[%s934_s0 + $0x70] sm:$0xff] }
  0x37   :  { %166 = vmatpush2.msra.mxu0 %v79_v14  ;;  %v261_v40 = vld [vmem:[%s937_s3 + $0x98] sm:$0xff]  ;;  %v260_v42 = vld [vmem:[%s937_s3 + $0x90] sm:$0xff]  ;;  %v259_v44 = vld [vmem:[%s937_s3 + $0x88] sm:$0xff] }
  0x38   :  { %167 = vmatprep.subr.mxu0 %v78_v15  ;;  %483 = vmatprep.subr.mxu1 %v261_v40  ;;  %v245_v41 = vld [vmem:[%s937_s3 + $0x18] sm:$0xff]  ;;  %v244_v43 = vld [vmem:[%s937_s3 + $0x10] sm:$0xff]  ;;  %v243_v45 = vld [vmem:[%s937_s3 + $0x8] sm:$0xff] }
  0x39   :  { %168 = vmatpush2.msra.mxu0 %v77_v16  ;;  %484 = vmatpush3.msra.mxu1 %v245_v41  ;;  %v258_v46 = vld [vmem:[%s937_s3 + $0x80] sm:$0xff] }
  0x3a   :  { %169 = vmatprep.subr.mxu0 %v76_v17  ;;  %485 = vmatprep.subr.mxu1 %v260_v42  ;;  %v242_v47 = vld [vmem:[%s937_s3] sm:$0xff] }
  0x3b   :  { %170 = vmatpush2.msra.mxu0 %v75_v18  ;;  %486 = vmatpush3.msra.mxu1 %v244_v43  ;;  %v101_v51 = vld [vmem:[%s936_s2] sm:$0x3] }
  0x3c   :  { %171 = vmatprep.subr.mxu0 %v74_v19  ;;  %487 = vmatprep.subr.mxu1 %v259_v44  ;;  %v106_v53 = vrot.slane %v101_v51, %v105_v50  ;;  %v110_v54 = vrot.slane %v101_v51, %v109_v52  ;;  %v458_v41 = vld [vmem:[%s938_s4] ss:$0 sm:$0xff]  ;;  %s556_s4 = smov [#allocation2]  }
  0x3d   :  { %172 = vmatpush2.msra.mxu0 %v73_v20  ;;  %488 = vmatpush3.msra.mxu1 %v243_v45  ;;  %s447_s16 = sshll.u32 %s556_s4, 4  ;;  %s448_s16 = int_to_ptr.vmem [resolvable:$true] %s447_s16 }
  0x3e   :  { %173 = vmatprep.subr.mxu0 %v72_v21  ;;  %489 = vmatprep.subr.mxu1 %v258_v46  ;;  %s534_s17 = scalar_lea.vmem %s448_s16, 1024  ;;  %p539_p1 = scmp.lt.s32.totalorder %s448_s16, %s448_s16 }
  0x3f   :  { %174 = vmatpush2.msra.mxu0 %v71_v22  ;;  %490 = vmatpush3.msra.mxu1 %v242_v47  ;;  %p535_p0 = scmp.ne.s32.totalorder %s448_s16, %s534_s17  ;;  %p540_p2 = scmp.lt.s32.totalorder %s534_s17, %s534_s17 }
  0x40   :  { %175 = vmatprep.subr.mxu0 %v70_v23 }
  0x41   :  { %176 = vmatpush2.msra.mxu0 %v69_v24  ;;  %p541_p3 = por %p540_p2, %p539_p1 }
  0x42   :  { %178 = vmatmul.mubr.f32.vlgmr.msra.gmra.mxu0 %v21_v25 }
  0x43   :  { %183 = vmatprep.mubr.f32.mxu0 %v24_v26  ;;  %p542_p4 = pnand %p541_p3, %p535_p0 }
  0x46   :  { %184 = vmatmul.mubr.f32.gmra.mxu0 %v23_v27 }
  0x47   :  { %189 = vmatprep.mubr.f32.mxu0 %v26_v28 }
  0x4a   :  { %190 = vmatmul.mubr.f32.gmra.mxu0 %v25_v29 }
  0x4b   :  { %195 = vmatprep.mubr.f32.mxu0 %v28_v30 }
  0x4e   :  { %196 = vmatmul.mubr.f32.gmra.mxu0 %v27_v31 }
  0x4f   :  { %201 = vmatprep.mubr.f32.mxu0 %v30_v32 }
  0x52   :  { %202 = vmatmul.mubr.f32.gmra.mxu0 %v29_v33 }
  0x53   :  { %207 = vmatprep.mubr.f32.mxu0 %v32_v34 }
  0x56   :  { %208 = vmatmul.mubr.f32.gmra.mxu0 %v31_v35 }
  0x57   :  { %213 = vmatprep.mubr.f32.mxu0 %v34_v36 }
  0x5a   :  { %214 = vmatmul.mubr.f32.gmra.mxu0 %v33_v37 }
  0x5b   :  { %219 = vmatprep.mubr.f32.mxu0 %v36_v38 }
  0x5e   :  { %220 = vmatmul.mubr.f32.gmra.mxu0 %v35_v39 }
 0x102   :  { %v179_v55 = vpop.f32.mrf.mxu0 }
 0x103   :  { %v180_v56 = vadd.f32 %v179_v55, %v106_v53 }
 0x104   :  { %v181_v57 = vpop.f32.mrf.mxu0 }
 0x105   :  { %v182_v58 = vadd.f32 %v181_v57, %v110_v54  ;;  %v226_v61 = vmax.f32 %v180_v56, 0.0 }
 0x106   :  { %v185_v59 = vpop.f32.mrf.mxu0 }
 0x107   :  { %v227_v60 = vmax.f32 %v182_v58, 0.0  ;;  %v186_v62 = vadd.f32 %v185_v59, %v106_v53 }
 0x108   :  { %v187_v63 = vpop.f32.mrf.mxu0 }
 0x109   :  { %v188_v0 = vadd.f32 %v187_v63, %v110_v54  ;;  %345 = vmatprep.mubr.f32.mxu1 %v227_v60  ;;  %v228_v3 = vmax.f32 %v186_v62, 0.0 }
 0x10a   :  { %v191_v1 = vpop.f32.mrf.mxu0  ;;  %346 = vmatmul.mubr.f32.vlgmr.msra.gmra.mxu1 %v226_v61 }
 0x10b   :  { %v229_v2 = vmax.f32 %v188_v0, 0.0  ;;  %v192_v4 = vadd.f32 %v191_v1, %v106_v53 }
 0x10c   :  { %v193_v5 = vpop.f32.mrf.mxu0 }
 0x10d   :  { %v194_v6 = vadd.f32 %v193_v5, %v110_v54  ;;  %350 = vmatprep.mubr.f32.mxu1 %v229_v2  ;;  %v230_v9 = vmax.f32 %v192_v4, 0.0 }
 0x10e   :  { %v197_v7 = vpop.f32.mrf.mxu0  ;;  %351 = vmatmul.mubr.f32.gmra.mxu1 %v228_v3 }
 0x10f   :  { %v231_v8 = vmax.f32 %v194_v6, 0.0  ;;  %v198_v10 = vadd.f32 %v197_v7, %v106_v53 }
 0x110   :  { %v199_v11 = vpop.f32.mrf.mxu0 }
 0x111   :  { %v200_v12 = vadd.f32 %v199_v11, %v110_v54  ;;  %355 = vmatprep.mubr.f32.mxu1 %v231_v8  ;;  %v232_v15 = vmax.f32 %v198_v10, 0.0 }
 0x112   :  { %v203_v13 = vpop.f32.mrf.mxu0  ;;  %356 = vmatmul.mubr.f32.gmra.mxu1 %v230_v9 }
 0x113   :  { %v233_v14 = vmax.f32 %v200_v12, 0.0  ;;  %v204_v16 = vadd.f32 %v203_v13, %v106_v53 }
 0x114   :  { %v205_v17 = vpop.f32.mrf.mxu0 }
 0x115   :  { %v206_v18 = vadd.f32 %v205_v17, %v110_v54  ;;  %360 = vmatprep.mubr.f32.mxu1 %v233_v14  ;;  %v234_v21 = vmax.f32 %v204_v16, 0.0 }
 0x116   :  { %v209_v19 = vpop.f32.mrf.mxu0  ;;  %361 = vmatmul.mubr.f32.gmra.mxu1 %v232_v15 }
 0x117   :  { %v235_v20 = vmax.f32 %v206_v18, 0.0  ;;  %v210_v22 = vadd.f32 %v209_v19, %v106_v53 }
 0x118   :  { %v211_v23 = vpop.f32.mrf.mxu0 }
 0x119   :  { %v212_v24 = vadd.f32 %v211_v23, %v110_v54  ;;  %365 = vmatprep.mubr.f32.mxu1 %v235_v20  ;;  %v236_v27 = vmax.f32 %v210_v22, 0.0 }
 0x11a   :  { %v215_v25 = vpop.f32.mrf.mxu0  ;;  %366 = vmatmul.mubr.f32.gmra.mxu1 %v234_v21 }
 0x11b   :  { %v237_v26 = vmax.f32 %v212_v24, 0.0  ;;  %v216_v28 = vadd.f32 %v215_v25, %v106_v53 }
 0x11c   :  { %v217_v29 = vpop.f32.mrf.mxu0 }
 0x11d   :  { %v218_v30 = vadd.f32 %v217_v29, %v110_v54  ;;  %370 = vmatprep.mubr.f32.mxu1 %v237_v26  ;;  %v238_v33 = vmax.f32 %v216_v28, 0.0 }
 0x11e   :  { %v221_v31 = vpop.f32.mrf.mxu0  ;;  %371 = vmatmul.mubr.f32.gmra.mxu1 %v236_v27 }
 0x11f   :  { %v239_v32 = vmax.f32 %v218_v30, 0.0  ;;  %v222_v34 = vadd.f32 %v221_v31, %v106_v53 }
 0x120   :  { %v223_v35 = vpop.f32.mrf.mxu0 }
 0x121   :  { %v224_v36 = vadd.f32 %v223_v35, %v110_v54  ;;  %375 = vmatprep.mubr.f32.mxu1 %v239_v32  ;;  %v240_v38 = vmax.f32 %v222_v34, 0.0 }
 0x122   :  { %376 = vmatmul.mubr.f32.gmra.mxu1 %v238_v33 }
 0x123   :  { %v241_v37 = vmax.f32 %v224_v36, 0.0 }
 0x125   :  { %380 = vmatprep.mubr.f32.mxu1 %v241_v37 }
 0x126   :  { %381 = vmatmul.mubr.f32.gmra.mxu1 %v240_v38 }
 0x1ca   :  { %v491_v39 = vpop.f32.mrf.mxu1 }
 0x1cc   :  { %v492_v40 = vpop.f32.mrf.mxu1 }
 0x1cd   :  { %v493_v42 = vadd.f32 %v492_v40, %v491_v39 }
 0x1ce   :  { %v494_v43 = vpop.f32.mrf.mxu1 }
 0x1cf   :  { %v348_v44 = vadd.f32 %v493_v42, %v458_v41 }
 0x1d0   :  { %v495_v45 = vpop.f32.mrf.mxu1 }
 0x1d1   :  { %v496_v46 = vadd.f32 %v495_v45, %v494_v43  ;;  %v386_v47 = vmul.f32 %v348_v44, %v348_v44 }
 0x1d2   :  { %v497_v48 = vpop.f32.mrf.mxu1 }
 0x1d3   :  { %v353_v49 = vadd.f32 %v496_v46, %v458_v41  ;;  %394 = vadd.xlane.f32.xlu0 %v386_v47 }
 0x1d4   :  { %v498_v50 = vpop.f32.mrf.mxu1 }
 0x1d5   :  { %v499_v51 = vadd.f32 %v498_v50, %v497_v48  ;;  %v387_v52 = vmul.f32 %v353_v49, %v353_v49 }
 0x1d6   :  { %v500_v53 = vpop.f32.mrf.mxu1 }
 0x1d7   :  { %396 = vadd.xlane.f32.xlu0 %v387_v52  ;;  %v358_v54 = vadd.f32 %v499_v51, %v458_v41 }
 0x1d8   :  { %v501_v55 = vpop.f32.mrf.mxu1 }
 0x1d9   :  { %v502_v56 = vadd.f32 %v501_v55, %v500_v53  ;;  %v388_v57 = vmul.f32 %v358_v54, %v358_v54 }
 0x1da   :  { %v503_v58 = vpop.f32.mrf.mxu1 }
 0x1db   :  { %v363_v59 = vadd.f32 %v502_v56, %v458_v41  ;;  %398 = vadd.xlane.f32.xlu1 %v388_v57 }
 0x1dc   :  { %v504_v60 = vpop.f32.mrf.mxu1 }
 0x1dd   :  { %v505_v61 = vadd.f32 %v504_v60, %v503_v58  ;;  %v389_v62 = vmul.f32 %v363_v59, %v363_v59 }
 0x1de   :  { %v506_v63 = vpop.f32.mrf.mxu1 }
 0x1df   :  { %v368_v0 = vadd.f32 %v505_v61, %v458_v41  ;;  %400 = vadd.xlane.f32.xlu1 %v389_v62 }
 0x1e0   :  { %v507_v1 = vpop.f32.mrf.mxu1 }
 0x1e1   :  { %v508_v2 = vadd.f32 %v507_v1, %v506_v63  ;;  %v390_v3 = vmul.f32 %v368_v0, %v368_v0 }
 0x1e2   :  { %v509_v4 = vpop.f32.mrf.mxu1 }
 0x1e3   :  { %v373_v5 = vadd.f32 %v508_v2, %v458_v41  ;;  %402 = vadd.xlane.f32.xlu0 %v390_v3 }
 0x1e4   :  { %v510_v6 = vpop.f32.mrf.mxu1 }
 0x1e5   :  { %v511_v7 = vadd.f32 %v510_v6, %v509_v4  ;;  %v391_v8 = vmul.f32 %v373_v5, %v373_v5 }
 0x1e6   :  { %v512_v9 = vpop.f32.mrf.mxu1 }
 0x1e7   :  { %v378_v10 = vadd.f32 %v511_v7, %v458_v41  ;;  %404 = vadd.xlane.f32.xlu1 %v391_v8 }
 0x1e8   :  { %v513_v11 = vpop.f32.mrf.mxu1 }
 0x1e9   :  { %v514_v12 = vadd.f32 %v513_v11, %v512_v9  ;;  %v392_v13 = vmul.f32 %v378_v10, %v378_v10 }
 0x1eb   :  { %v383_v14 = vadd.f32 %v514_v12, %v458_v41  ;;  %406 = vadd.xlane.f32.xlu0 %v392_v13 }
 0x1ed   :  { %v393_v15 = vmul.f32 %v383_v14, %v383_v14 }
 0x1ef   :  { %408 = vadd.xlane.f32.xlu1 %v393_v15 }
 0x25c   :  { %v395_v16 = vpop.xlane.xlu0 %394 }
 0x25d   :  { %v410_v17 = vmax.f32 %v395_v16, 1e-24 }
 0x25f   :  { %518 = vrsqrt.f32 %v410_v17 }
 0x260   :  { %v397_v18 = vpop.xlane.xlu0 %396 }
 0x261   :  { %v411_v19 = vmax.f32 %v397_v18, 1e-24 }
 0x263   :  { %520 = vrsqrt.f32 %v411_v19 }
 0x264   :  { %v399_v20 = vpop.xlane.xlu1 %398 }
 0x265   :  { %v412_v21 = vmax.f32 %v399_v20, 1e-24 }
 0x267   :  { %522 = vrsqrt.f32 %v412_v21 }
 0x268   :  { %v401_v22 = vpop.xlane.xlu1 %400 }
 0x269   :  { %v413_v23 = vmax.f32 %v401_v22, 1e-24 }
 0x26b   :  { %524 = vrsqrt.f32 %v413_v23 }
 0x26c   :  { %v519_v24 = vpop.eup %518  ;;  %v403_v25 = vpop.xlane.xlu0 %402 }
 0x26d   :  { %v426_v26 = vmul.f32 %v519_v24, %v348_v44  ;;  %v414_v27 = vmax.f32 %v403_v25, 1e-24 }
 0x26f   :  { %434 = vst [vmem:[#allocation2] sm:$0xff] %v426_v26  ;;  %526 = vrsqrt.f32 %v414_v27 }
 0x270   :  { %v521_v28 = vpop.eup %520  ;;  %v405_v29 = vpop.xlane.xlu1 %404 }
 0x271   :  { %v427_v30 = vmul.f32 %v521_v28, %v353_v49  ;;  %v415_v31 = vmax.f32 %v405_v29, 1e-24 }
 0x273   :  { %435 = vst [vmem:[#allocation2 + $0x8] sm:$0xff] %v427_v30  ;;  %528 = vrsqrt.f32 %v415_v31 }
 0x274   :  { %v523_v32 = vpop.eup %522  ;;  %v407_v33 = vpop.xlane.xlu0 %406 }
 0x275   :  { %v428_v34 = vmul.f32 %v523_v32, %v358_v54  ;;  %v416_v35 = vmax.f32 %v407_v33, 1e-24 }
 0x277   :  { %436 = vst [vmem:[#allocation2 + $0x10] sm:$0xff] %v428_v34  ;;  %530 = vrsqrt.f32 %v416_v35 }
 0x278   :  { %v525_v36 = vpop.eup %524  ;;  %v409_v37 = vpop.xlane.xlu1 %408 }
 0x279   :  { %v429_v38 = vmul.f32 %v525_v36, %v363_v59  ;;  %v417_v39 = vmax.f32 %v409_v37, 1e-24 }
 0x27b   :  { %437 = vst [vmem:[#allocation2 + $0x18] sm:$0xff] %v429_v38  ;;  %532 = vrsqrt.f32 %v417_v39 }
 0x27c   :  { %v527_v40 = vpop.eup %526 }
 0x27d   :  { %v430_v41 = vmul.f32 %v527_v40, %v368_v0 }
 0x27f   :  { %438 = vst [vmem:[#allocation2 + $0x20] sm:$0xff] %v430_v41 }
 0x280   :  { %v529_v42 = vpop.eup %528 }
 0x281   :  { %v431_v43 = vmul.f32 %v529_v42, %v373_v5 }
 0x283   :  { %439 = vst [vmem:[#allocation2 + $0x28] sm:$0xff] %v431_v43 }
 0x284   :  { %v531_v44 = vpop.eup %530 }
 0x285   :  { %v432_v45 = vmul.f32 %v531_v44, %v378_v10 }
 0x287   :  { %440 = vst [vmem:[#allocation2 + $0x30] sm:$0xff] %v432_v45 }
 0x288   :  { %v533_v46 = vpop.eup %532 }
 0x289   :  { %v433_v47 = vmul.f32 %v533_v46, %v383_v14 }
 0x28b   :  { %441 = vst [vmem:[#allocation2 + $0x38] sm:$0xff] %v433_v47 }
 0x28c   :  { %545 = shalt.err (!%p542_p4)
}
 0x28d   :  { %s557_s18 = smov 128   ;;  %s558_s19 = smov 8  }
 0x28e   :  { %453 = dma.vmem_to_hbm [thread:$0]  %s448_s16, 1024, %s939_s5, [#allocation3], %s557_s18, %s557_s18, %s558_s19  }
 0x28f   :  { %554 = dma.done.wait [#allocation3], 1024  }
 0x290   :  { %555 = vsyncadd [#allocation3], 4294966272 }
 0x291   :  { %457 = vsyncpa [#allocation3], 1 }

</bundles_post_ra>
